<compile_context>
chip_gen: v7x
topology: tpu7x:2x2x1
jax: 0.10.0
libtpu: 0.0.40
codegen_flags: <defaults>
</compile_context>

<pallas_src>
import functools

import jax
import jax.numpy as jnp
from jax.experimental import pallas as pl
from jax.experimental.pallas import tpu as pltpu

_INV_SQRT2 = 0.7071067811865476        # 1/sqrt(2)
_SQRT_2_OVER_PI = 0.7978845608028654   # sqrt(2/pi)
_INV_SQRT_PI = 0.5641895835477563      # 1/sqrt(pi)
_LANES = 128


def _default_core_splits():
    """2 grid splits on multi-TensorCore chips, 1 on single-TC (v5e/v6e)."""
    try:
        kind = jax.devices()[0].device_kind.lower()
    except Exception:
        return 2
    if any(t in kind for t in ("v5e", "v5 lite", "v5lite", "v6e", "v6 lite", "v6lite")):
        return 1
    return 2  # v4 / v5p megacore, v7x dual-TC, unknown -> split is near-free anyway


def _crps_kernel(mean_ref, std_ref, y_ref, out_ref, acc_ref, *,
                 total_count, tile_rows, steps, acc_rows):
    c = pl.program_id(0)           # core-split axis ("parallel")
    i = pl.program_id(1)           # reduction axis ("arbitrary")

    @pl.when(i == 0)
    def _init():
        acc_ref[...] = jnp.zeros_like(acc_ref)

    # Stream in native dtype, cast in-kernel (free VPU filler; halves HBM for bf16).
    mean = mean_ref[...].astype(jnp.float32)
    sig = std_ref[...].astype(jnp.float32)
    y = y_ref[...].astype(jnp.float32)

    eps = jnp.abs(y - mean)                          # epsilon_error
    r0 = pl.reciprocal(sig, approx=True)             # EUP slot
    inv_sig = r0 * (2.0 - sig * r0)                  # one Newton-Raphson refinement
    z = eps * inv_sig
    crps = (eps * jax.lax.erf(z * _INV_SQRT2)
            + sig * (_SQRT_2_OVER_PI * jnp.exp(-0.5 * z * z) - _INV_SQRT_PI))

    def fold(tile):
        # Unrolled, vreg-aligned (acc_rows,128) static-slice adds: pure VPU,
        # 8 independent vreg chains, no reshape/relayout.
        part = tile[0:acc_rows, :]
        for k in range(1, tile_rows // acc_rows):
            part = part + tile[k * acc_rows:(k + 1) * acc_rows, :]
        return part

    # Logical (unclamped) element index of this grid step's first element.
    block_elems = tile_rows * _LANES
    block_start = (c * steps + i) * block_elems
    interior = block_start + block_elems <= total_count

    @pl.when(interior)
    def _acc_interior():                             # fast path: no mask ops
        acc_ref[...] += fold(crps)

    @pl.when(jnp.logical_not(interior))
    def _acc_boundary():
        # Block-local indices (always < tile_rows*128, int32-safe); remaining may
        # be <= 0 for fully-padded / clamped duplicate steps -> contributes zero.
        remaining = total_count - block_start
        row_ids = jax.lax.broadcasted_iota(jnp.int32, (tile_rows, _LANES), 0)
        lane_ids = jax.lax.broadcasted_iota(jnp.int32, (tile_rows, _LANES), 1)
        local = row_ids * _LANES + lane_ids
        acc_ref[...] += fold(jnp.where(local < remaining, crps, 0.0))

    @pl.when(i == steps - 1)
    def _finalize():
        out_ref[...] = acc_ref[...]


def crsp_loss(y_pred, y_true, *, tile_rows=2048, num_core_splits=None):
    """CRPS loss. y_pred: (..., 2), y_true: (...). Returns scalar f32."""
    if num_core_splits is None:
        num_core_splits = _default_core_splits()
    tile_rows = max(8, (tile_rows // 8) * 8)

    # Keep native dtypes (kernel casts); the (...,2) de-interleave stays in XLA.
    mean = y_pred[..., 0].reshape(-1)
    std = y_pred[..., 1].reshape(-1)
    y = y_true.reshape(-1)
    total = int(y.shape[0])
    if total == 0:
        return jnp.array(jnp.nan, dtype=jnp.float32)

    # Pad (only if ragged) to a multiple of 8*128 so the flat arrays reshape to
    # (rows, 128) with rows % 8 == 0.  Everything else (partial final block,
    # clamped duplicate steps) is handled by the in-kernel boundary mask.
    chunk = 8 * _LANES
    padded_total = ((total + chunk - 1) // chunk) * chunk
    pad = padded_total - total
    if pad:
        mean = jnp.pad(mean, (0, pad))
        std = jnp.pad(std, (0, pad))
        y = jnp.pad(y, (0, pad))
    rows = padded_total // _LANES

    mean2 = mean.reshape(rows, _LANES)
    std2 = std.reshape(rows, _LANES)
    y2 = y.reshape(rows, _LANES)

    tr = min(tile_rows, rows)                      # both multiples of 8
    row_blocks = pl.cdiv(rows, tr)
    splits = max(1, min(num_core_splits, row_blocks))
    steps = pl.cdiv(row_blocks, splits)
    acc_rows = 32 if tr % 32 == 0 else 8

    # Clamp the data block index so the (at most splits-1) trailing duplicate
    # steps never DMA out of bounds; their contribution is masked to zero.
    def in_map(c, i):
        return (jnp.minimum(c * steps + i, row_blocks - 1), 0)

    in_spec = pl.BlockSpec((tr, _LANES), in_map)
    out_spec = pl.BlockSpec((acc_rows, _LANES), lambda c, i: (c, 0))

    kern = functools.partial(_crps_kernel, total_count=total, tile_rows=tr,
                             steps=steps, acc_rows=acc_rows)

    bytes_in = padded_total * (mean2.dtype.itemsize + std2.dtype.itemsize
                               + y2.dtype.itemsize)
    cost = pl.CostEstimate(flops=32 * total, transcendentals=3 * total,
                           bytes_accessed=bytes_in + splits * acc_rows * _LANES * 4)

    partials = pl.pallas_call(
        kern,
        out_shape=jax.ShapeDtypeStruct((splits * acc_rows, _LANES), jnp.float32),
        grid_spec=pltpu.PrefetchScalarGridSpec(
            num_scalar_prefetch=0,
            grid=(splits, steps),
            in_specs=[in_spec, in_spec, in_spec],
            out_specs=out_spec,
            scratch_shapes=[pltpu.VMEM((acc_rows, _LANES), jnp.float32)],
        ),
        compiler_params=pltpu.CompilerParams(
            dimension_semantics=("parallel", "arbitrary"),
            vmem_limit_bytes=32 * 1024 * 1024,
        ),
        cost_estimate=cost,
    )(mean2, std2, y2)

    # Tiny final lane/sublane reduce + mean in the wrapper.
    return jnp.sum(partials) / jnp.float32(total)


def crsp_ref(y_pred, y_true):
    """Pure-JAX reference mirroring the PyTorch forward."""
    mean = y_pred[..., 0]
    std = y_pred[..., 1]
    eps = jnp.abs(y_true - mean)
    crps = std * (
        eps / std * jax.lax.erf(eps / (jnp.sqrt(2.0) * std))
        + jnp.sqrt(2.0 / jnp.pi) * jnp.exp(-eps**2 / (2.0 * std**2))
        - 1.0 / jnp.sqrt(jnp.pi)
    )
    return jnp.mean(crps)


if __name__ == "__main__":
    # Case 1: aligned (2*512 = 1024 elements -> exactly 8 rows, no pad, no mask).
    k1, k2, k3 = jax.random.split(jax.random.PRNGKey(0), 3)
    B, S = 2, 512
    mean = jax.random.normal(k1, (B, S), dtype=jnp.float32)
    std = jax.random.uniform(k2, (B, S), dtype=jnp.float32, minval=0.1, maxval=1.5)
    y_pred = jnp.stack([mean, std], axis=-1)          # (B, S, 2)
    y_true = jax.random.normal(k3, (B, S), dtype=jnp.float32)
    loss = jax.block_until_ready(crsp_loss(y_pred, y_true))
    ref = crsp_ref(y_pred, y_true)
    assert jnp.allclose(loss, ref, rtol=1e-5, atol=1e-5), (loss, ref)

    # Case 2: ragged (3*100 = 300 elements) -> wrapper pad + runtime boundary mask.
    k4, k5, k6 = jax.random.split(jax.random.PRNGKey(1), 3)
    mean2 = jax.random.normal(k4, (3, 100), dtype=jnp.float32)
    std2 = jax.random.uniform(k5, (3, 100), dtype=jnp.float32, minval=0.1, maxval=1.5)
    y_pred2 = jnp.stack([mean2, std2], axis=-1)
    y_true2 = jax.random.normal(k6, (3, 100), dtype=jnp.float32)
    loss2 = jax.block_until_ready(crsp_loss(y_pred2, y_true2))
    ref2 = crsp_ref(y_pred2, y_true2)
    assert jnp.allclose(loss2, ref2, rtol=1e-5, atol=1e-5), (loss2, ref2)

    # Case 3: multi-block / multi-split with a partial final block and a clamped
    # duplicate grid step (10*512 = 5120 elements, tiny tiles force the paths).
    k7, k8, k9 = jax.random.split(jax.random.PRNGKey(2), 3)
    mean3 = jax.random.normal(k7, (10, 512), dtype=jnp.float32)
    std3 = jax.random.uniform(k8, (10, 512), dtype=jnp.float32, minval=0.1, maxval=1.5)
    y_pred3 = jnp.stack([mean3, std3], axis=-1)
    y_true3 = jax.random.normal(k9, (10, 512), dtype=jnp.float32)
    loss3 = jax.block_until_ready(
        crsp_loss(y_pred3, y_true3, tile_rows=16, num_core_splits=2))
    ref3 = crsp_ref(y_pred3, y_true3)
    assert jnp.allclose(loss3, ref3, rtol=1e-5, atol=1e-5), (loss3, ref3)

    print("KERNEL_OK")
</pallas_src>

<mosaic_0001>
module attributes {stable_mosaic.version = 11 : i64} {
  func.func @_crps_kernel(%arg0: i32, %arg1: i32, %arg2: memref<8x128xf32, #tpu.memory_space<vmem>>, %arg3: memref<8x128xf32, #tpu.memory_space<vmem>>, %arg4: memref<8x128xf32, #tpu.memory_space<vmem>>, %arg5: memref<8x128xf32, #tpu.memory_space<vmem>>, %arg6: memref<8x128xf32, #tpu.memory_space<vmem>>) attributes {dimension_semantics = [#tpu.dimension_semantics<parallel>, #tpu.dimension_semantics<arbitrary>], iteration_bounds = array<i64: 1, 1>, scalar_prefetch = 0 : i64, scratch_operands = 1 : i64, tpu.core_type = #tpu.core_type<tc>, window_params = [{transform_indices = @transform_0, window_bounds = array<i64: 8, 128>}, {transform_indices = @transform_1, window_bounds = array<i64: 8, 128>}, {transform_indices = @transform_2, window_bounds = array<i64: 8, 128>}, {transform_indices = @transform_3, window_bounds = array<i64: 8, 128>}]} {
    %c0_i32 = arith.constant 0 : i32
    %0 = arith.cmpi eq, %arg1, %c0_i32 : i32
    %1 = arith.extui %0 : i1 to i32
    %c0_i32_0 = arith.constant 0 : i32
    %2 = arith.cmpi ne, %1, %c0_i32_0 : i32
    scf.if %2 {
      %cst_16 = arith.constant 0.000000e+00 : f32
      %41 = vector.broadcast %cst_16 : f32 to vector<8x128xf32>
      %c0_17 = arith.constant 0 : index
      %c0_18 = arith.constant 0 : index
      %42 = vector.load %arg6[%c0_17, %c0_18] : memref<8x128xf32, #tpu.memory_space<vmem>>, vector<8x128xf32>
      tpu.vector_store %arg6[%c0_17, %c0_18], %41 {strides = array<i32>} : memref<8x128xf32, #tpu.memory_space<vmem>>, vector<8x128xf32>,
    } else {
    }
    %c0 = arith.constant 0 : index
    %c0_1 = arith.constant 0 : index
    %3 = vector.load %arg2[%c0, %c0_1] : memref<8x128xf32, #tpu.memory_space<vmem>>, vector<8x128xf32>
    %c0_2 = arith.constant 0 : index
    %c0_3 = arith.constant 0 : index
    %4 = vector.load %arg3[%c0_2, %c0_3] : memref<8x128xf32, #tpu.memory_space<vmem>>, vector<8x128xf32>
    %c0_4 = arith.constant 0 : index
    %c0_5 = arith.constant 0 : index
    %5 = vector.load %arg4[%c0_4, %c0_5] : memref<8x128xf32, #tpu.memory_space<vmem>>, vector<8x128xf32>
    %6 = arith.subf %5, %3 : vector<8x128xf32>
    %7 = math.absf %6 : vector<8x128xf32>
    %8 = tpu.reciprocal %4 {approx = true} : vector<8x128xf32> -> vector<8x128xf32>
    %9 = arith.mulf %4, %8 : vector<8x128xf32>
    %cst = arith.constant 2.000000e+00 : f32
    %10 = vector.broadcast %cst : f32 to vector<8x128xf32>
    %11 = arith.subf %10, %9 : vector<8x128xf32>
    %12 = arith.mulf %8, %11 : vector<8x128xf32>
    %13 = arith.mulf %7, %12 : vector<8x128xf32>
    %cst_6 = arith.constant 0.707106769 : f32
    %14 = vector.broadcast %cst_6 : f32 to vector<8x128xf32>
    %15 = arith.mulf %13, %14 : vector<8x128xf32>
    %16 = math.erf %15 : vector<8x128xf32>
    %17 = arith.mulf %7, %16 : vector<8x128xf32>
    %cst_7 = arith.constant -5.000000e-01 : f32
    %18 = vector.broadcast %cst_7 : f32 to vector<8x128xf32>
    %19 = arith.mulf %18, %13 : vector<8x128xf32>
    %20 = arith.mulf %19, %13 : vector<8x128xf32>
    %21 = math.exp %20 : vector<8x128xf32>
    %cst_8 = arith.constant 0.797884583 : f32
    %22 = vector.broadcast %cst_8 : f32 to vector<8x128xf32>
    %23 = arith.mulf %22, %21 : vector<8x128xf32>
    %cst_9 = arith.constant 0.564189613 : f32
    %24 = vector.broadcast %cst_9 : f32 to vector<8x128xf32>
    %25 = arith.subf %23, %24 : vector<8x128xf32>
    %26 = arith.mulf %4, %25 : vector<8x128xf32>
    %27 = arith.addf %17, %26 : vector<8x128xf32>
    %c1_i32 = arith.constant 1 : i32
    %28 = arith.muli %arg0, %c1_i32 : i32
    %29 = arith.addi %28, %arg1 : i32
    %c1024_i32 = arith.constant 1024 : i32
    %30 = arith.muli %29, %c1024_i32 : i32
    %c1024_i32_10 = arith.constant 1024 : i32
    %31 = arith.addi %30, %c1024_i32_10 : i32
    %c1024_i32_11 = arith.constant 1024 : i32
    %32 = arith.cmpi sle, %31, %c1024_i32_11 : i32
    %33 = arith.extui %32 : i1 to i32
    %c0_i32_12 = arith.constant 0 : i32
    %34 = arith.cmpi ne, %33, %c0_i32_12 : i32
    scf.if %34 {
      %c0_16 = arith.constant 0 : index
      %c0_17 = arith.constant 0 : index
      %41 = vector.load %arg6[%c0_16, %c0_17] : memref<8x128xf32, #tpu.memory_space<vmem>>, vector<8x128xf32>
      %42 = arith.addf %41, %27 : vector<8x128xf32>
      %c0_18 = arith.constant 0 : index
      %c0_19 = arith.constant 0 : index
      %43 = vector.load %arg6[%c0_18, %c0_19] : memref<8x128xf32, #tpu.memory_space<vmem>>, vector<8x128xf32>
      tpu.vector_store %arg6[%c0_18, %c0_19], %42 {strides = array<i32>} : memref<8x128xf32, #tpu.memory_space<vmem>>, vector<8x128xf32>,
    } else {
    }
    %true = arith.constant true
    %35 = arith.xori %32, %true : i1
    %36 = arith.extui %35 : i1 to i32
    %c0_i32_13 = arith.constant 0 : i32
    %37 = arith.cmpi ne, %36, %c0_i32_13 : i32
    scf.if %37 {
      %c1024_i32_16 = arith.constant 1024 : i32
      %41 = arith.subi %c1024_i32_16, %30 : i32
      %42 = tpu.iota {dimensions = array<i32: 0>} : vector<8x128xi32>
      %43 = tpu.iota {dimensions = array<i32: 1>} : vector<8x128xi32>
      %c128_i32 = arith.constant 128 : i32
      %44 = vector.broadcast %c128_i32 : i32 to vector<8x128xi32>
      %45 = arith.muli %42, %44 : vector<8x128xi32>
      %46 = arith.addi %45, %43 : vector<8x128xi32>
      %c0_17 = arith.constant 0 : index
      %c0_18 = arith.constant 0 : index
      %47 = vector.load %arg6[%c0_17, %c0_18] : memref<8x128xf32, #tpu.memory_space<vmem>>, vector<8x128xf32>
      %48 = vector.broadcast %41 : i32 to vector<8x128xi32>
      %49 = arith.cmpi slt, %46, %48 : vector<8x128xi32>
      %cst_19 = arith.constant 0.000000e+00 : f32
      %50 = vector.broadcast %cst_19 : f32 to vector<8x128xf32>
      %51 = arith.select %49, %27, %50 : vector<8x128xi1>, vector<8x128xf32>
      %52 = arith.addf %47, %51 : vector<8x128xf32>
      %c0_20 = arith.constant 0 : index
      %c0_21 = arith.constant 0 : index
      %53 = vector.load %arg6[%c0_20, %c0_21] : memref<8x128xf32, #tpu.memory_space<vmem>>, vector<8x128xf32>
      tpu.vector_store %arg6[%c0_20, %c0_21], %52 {strides = array<i32>} : memref<8x128xf32, #tpu.memory_space<vmem>>, vector<8x128xf32>,
    } else {
    }
    %c0_i32_14 = arith.constant 0 : i32
    %38 = arith.cmpi eq, %arg1, %c0_i32_14 : i32
    %39 = arith.extui %38 : i1 to i32
    %c0_i32_15 = arith.constant 0 : i32
    %40 = arith.cmpi ne, %39, %c0_i32_15 : i32
    scf.if %40 {
      %c0_16 = arith.constant 0 : index
      %c0_17 = arith.constant 0 : index
      %41 = vector.load %arg6[%c0_16, %c0_17] : memref<8x128xf32, #tpu.memory_space<vmem>>, vector<8x128xf32>
      %c0_18 = arith.constant 0 : index
      %c0_19 = arith.constant 0 : index
      %42 = vector.load %arg5[%c0_18, %c0_19] : memref<8x128xf32, #tpu.memory_space<vmem>>, vector<8x128xf32>
      tpu.vector_store %arg5[%c0_18, %c0_19], %41 {strides = array<i32>} : memref<8x128xf32, #tpu.memory_space<vmem>>, vector<8x128xf32>,
    } else {
    }
    return
  }
  func.func @transform_0(%arg0: i32, %arg1: i32) -> (i32, i32) {
    %c1_i32 = arith.constant 1 : i32
    %0 = arith.muli %arg0, %c1_i32 : i32
    %1 = arith.addi %0, %arg1 : i32
    %c0_i32 = arith.constant 0 : i32
    %2 = arith.minsi %1, %c0_i32 : i32
    %c0_i32_0 = arith.constant 0 : i32
    %c0_i32_1 = arith.constant 0 : i32
    return %2, %c0_i32_0 : i32, i32
  }
  func.func @transform_1(%arg0: i32, %arg1: i32) -> (i32, i32) {
    %c1_i32 = arith.constant 1 : i32
    %0 = arith.muli %arg0, %c1_i32 : i32
    %1 = arith.addi %0, %arg1 : i32
    %c0_i32 = arith.constant 0 : i32
    %2 = arith.minsi %1, %c0_i32 : i32
    %c0_i32_0 = arith.constant 0 : i32
    %c0_i32_1 = arith.constant 0 : i32
    return %2, %c0_i32_0 : i32, i32
  }
  func.func @transform_2(%arg0: i32, %arg1: i32) -> (i32, i32) {
    %c1_i32 = arith.constant 1 : i32
    %0 = arith.muli %arg0, %c1_i32 : i32
    %1 = arith.addi %0, %arg1 : i32
    %c0_i32 = arith.constant 0 : i32
    %2 = arith.minsi %1, %c0_i32 : i32
    %c0_i32_0 = arith.constant 0 : i32
    %c0_i32_1 = arith.constant 0 : i32
    return %2, %c0_i32_0 : i32, i32
  }
  func.func @transform_3(%arg0: i32, %arg1: i32) -> (i32, i32) {
    %c0_i32 = arith.constant 0 : i32
    %c0_i32_0 = arith.constant 0 : i32
    return %arg0, %c0_i32 : i32, i32
  }
}

</mosaic_0001>

<bundles_post_ra>
// kernel: tpu_custom_call.1
= control target key start
LH: loop header
LB: loop body
LE: loop exit
PB: predicated region body
PF: predicated region fallthrough
CT: control target
= control target key end

     0   :  { %8 = vsyncpa [#allocation4], 0  ;;  %s331_s0 = inlined_call_operand.hbm [shape: f32[8,128], index: 0, kind: input, shape index: {}]   ;;  %s332_s1 = inlined_call_operand.hbm [shape: f32[8,128], index: 1, kind: input, shape index: {}]   ;;  %s333_s2 = inlined_call_operand.hbm [shape: f32[8,128], index: 2, kind: input, shape index: {}]   ;;  %s334_s3 = inlined_call_operand.hbm [shape: f32[8,128], index: 3, kind: output, shape index: {}]  }
   0x1   :  { %9 = vsyncpa [#allocation7], 0 }
   0x2   :  { %10 = vsyncpa [#allocation5], 0  ;;  %s259_s12 = smov [#allocation6]   ;;  %s260_s14 = smov [#allocation3]  }
   0x3   :  { %s37_s13 = sshll.u32 %s259_s12, 4  ;;  %s22_s15 = sshll.u32 %s260_s14, 4  ;;  %s38_s13 = int_to_ptr.vmem [resolvable:$true] %s37_s13  ;;  %s23_s15 = int_to_ptr.vmem [resolvable:$true] %s22_s15 }
   0x4   :  { %s165_s18 = scalar_lea.hbm %s332_s1, 128 }
   0x5   :  { %p166_p0 = scmp.ne.s32.totalorder %s332_s1, %s165_s18  ;;  %p169_p1 = scmp.lt.u32.totalorder %s165_s18, %s332_s1 }
   0x7   :  { %p171_p2 = pnand %p169_p1, %p166_p0 }
   0x9   :  { %174 = shalt.err (!%p171_p2)
}
   0xa   :  { %s175_s23 = scalar_lea.vmem %s38_s13, 128  ;;  %p180_p4 = scmp.lt.s32.totalorder %s38_s13, %s38_s13 }
   0xb   :  { %p176_p3 = scmp.ne.s32.totalorder %s38_s13, %s175_s23  ;;  %p181_p5 = scmp.lt.s32.totalorder %s175_s23, %s175_s23 }
   0xd   :  { %p182_p6 = por %p181_p5, %p180_p4 }
   0xf   :  { %p183_p7 = pnand %p182_p6, %p176_p3 }
  0x11   :  { %186 = shalt.err (!%p183_p7)
}
  0x12   :  { %40 = dma.hbm_to_vmem [thread:$0]  %s332_s1, 128, %s38_s13, [#allocation7]  }
  0x13   :  { %s187_s28 = scalar_lea.hbm %s331_s0, 128 }
  0x14   :  { %p188_p8 = scmp.ne.s32.totalorder %s331_s0, %s187_s28  ;;  %p191_p9 = scmp.lt.u32.totalorder %s187_s28, %s331_s0 }
  0x16   :  { %p193_p10 = pnand %p191_p9, %p188_p8 }
  0x18   :  { %196 = shalt.err (!%p193_p10)
}
  0x19   :  { %s197_s6 = scalar_lea.vmem %s23_s15, 128  ;;  %p202_p12 = scmp.lt.s32.totalorder %s23_s15, %s23_s15 }
  0x1a   :  { %p198_p11 = scmp.ne.s32.totalorder %s23_s15, %s197_s6  ;;  %p203_p13 = scmp.lt.s32.totalorder %s197_s6, %s197_s6 }
  0x1c   :  { %p204_p0 = por %p203_p13, %p202_p12 }
  0x1e   :  { %p205_p1 = pnand %p204_p0, %p198_p11 }
  0x20   :  { %208 = shalt.err (!%p205_p1)
}
  0x21   :  { %25 = dma.hbm_to_vmem [thread:$0]  %s331_s0, 128, %s23_s15, [#allocation4]  }
  0x22   :  { %s261_s8 = smov [#allocation8]   ;;  %s209_s12 = scalar_lea.hbm %s333_s2, 128 }
  0x23   :  { %s52_s9 = sshll.u32 %s261_s8, 4  ;;  %p210_p2 = scmp.ne.s32.totalorder %s333_s2, %s209_s12  ;;  %s53_s9 = int_to_ptr.vmem [resolvable:$true] %s52_s9 }
  0x24   :  { %p213_p3 = scmp.lt.u32.totalorder %s209_s12, %s333_s2 }
  0x26   :  { %p215_p4 = pnand %p213_p3, %p210_p2 }
  0x28   :  { %218 = shalt.err (!%p215_p4)
}
  0x29   :  { %s219_s18 = scalar_lea.vmem %s53_s9, 128  ;;  %p224_p6 = scmp.lt.s32.totalorder %s53_s9, %s53_s9 }
  0x2a   :  { %p220_p5 = scmp.ne.s32.totalorder %s53_s9, %s219_s18  ;;  %p225_p7 = scmp.lt.s32.totalorder %s219_s18, %s219_s18 }
  0x2c   :  { %p226_p8 = por %p225_p7, %p224_p6 }
  0x2e   :  { %p227_p9 = pnand %p226_p8, %p220_p5 }
  0x30   :  { %230 = shalt.err (!%p227_p9)
}
  0x31   :  { %55 = dma.hbm_to_vmem [thread:$0]  %s333_s2, 128, %s53_s9, [#allocation7]  }
  0x32   :  { %253 = dma.done.wait [#allocation4], 128  }
  0x33   :  { %254 = vsyncadd [#allocation4], 4294967168 }
  0x34   :  { %255 = dma.done.wait [#allocation7], 256  }
  0x35   :  { %256 = vsyncadd [#allocation7], 4294967040  ;;  %v80_v0 = vld [vmem:[#allocation6] sm:$0xff]  ;;  %v79_v1 = vld [vmem:[#allocation3] sm:$0xff]  ;;  %s262_s2 = smov [#allocation9]  }
  0x36   :  { %159 = vrcp.f32 %v80_v0  ;;  %v81_v2 = vld [vmem:[#allocation8] sm:$0xff]  ;;  %s138_s19 = sshll.u32 %s262_s2, 4  ;;  %s139_s19 = int_to_ptr.vmem [resolvable:$true] %s138_s19 }
  0x37   :  { %v82_v3 = vsub.f32 %v81_v2, %v79_v1  ;;  %s231_s20 = scalar_lea.vmem %s139_s19, 128  ;;  %p236_p11 = scmp.lt.s32.totalorder %s139_s19, %s139_s19 }
  0x38   :  { %p232_p10 = scmp.ne.s32.totalorder %s139_s19, %s231_s20  ;;  %p237_p12 = scmp.lt.s32.totalorder %s231_s20, %s231_s20 }
  0x39   :  { %v83_v6 = vand.u32 2147483647, %v82_v3 }
  0x3a   :  { %p238_p13 = por %p237_p12, %p236_p11 }
  0x3c   :  { %p239_p0 = pnand %p238_p13, %p232_p10 }
  0x40   :  { %v160_v4 = vpop.eup %159 }
  0x41   :  { %v85_v5 = vmul.f32 %v160_v4, %v80_v0 }
  0x43   :  { %v86_v7 = vsub.f32 2.0, %v85_v5 }
  0x45   :  { %v87_v8 = vmul.f32 %v160_v4, %v86_v7 }
  0x47   :  { %v88_v9 = vmul.f32 %v87_v8, %v83_v6 }
  0x49   :  { %v92_v10 = vmul.f32 -0.5, %v88_v9  ;;  %v89_v11 = vmul.f32 0.70710677, %v88_v9 }
  0x4b   :  { %v93_v12 = vmul.f32 %v92_v10, %v88_v9  ;;  %161 = verf.f32 %v89_v11 }
  0x4d   :  { %v94_v13 = vmul.f32 1.442695, %v93_v12 }
  0x4f   :  { %163 = vpow2.f32 %v94_v13 }
  0x55   :  { %v162_v14 = vpop.eup %161 }
  0x56   :  { %v91_v17 = vmul.f32 %v162_v14, %v83_v6 }
  0x59   :  { %v164_v15 = vpop.eup %163 }
  0x5a   :  { %v96_v16 = vmul.f32 0.7978846, %v164_v15 }
  0x5c   :  { %v154_v18 = vadd.f32 -0.5641896, %v96_v16 }
  0x5e   :  { %v98_v19 = vmul.f32 %v154_v18, %v80_v0 }
  0x60   :  { %v99_v20 = vadd.f32 %v98_v19, %v91_v17 }
  0x62   :  { %131 = vst [vmem:[#allocation9] sm:$0xff] %v99_v20 }
  0x63   :  { %242 = shalt.err (!%p239_p0)
}
  0x64   :  { %s243_s23 = scalar_lea.hbm %s334_s3, 128 }
  0x65   :  { %p244_p1 = scmp.ne.s32.totalorder %s334_s3, %s243_s23  ;;  %p247_p2 = scmp.lt.u32.totalorder %s243_s23, %s334_s3 }
  0x67   :  { %p249_p3 = pnand %p247_p2, %p244_p1 }
  0x69   :  { %252 = shalt.err (!%p249_p3)
}
  0x6a   :  { %141 = dma.vmem_to_hbm [thread:$0]  %s139_s19, 128, %s334_s3, [#allocation5]  }
  0x6b   :  { %257 = dma.done.wait [#allocation5], 128  }
  0x6c   :  { %258 = vsyncadd [#allocation5], 4294967168 }
  0x6d   :  { %145 = vsyncpa [#allocation4], 1 }
  0x6e   :  { %146 = vsyncpa [#allocation7], 1 }
  0x6f   :  { %147 = vsyncpa [#allocation5], 1 }

</bundles_post_ra>
